<compile_context>
chip_gen: v7x
topology: tpu7x:2x2x1
jax: 0.10.0
libtpu: 0.0.40
codegen_flags: <defaults>
</compile_context>

<pallas_src>
import functools
import math

import jax
import jax.numpy as jnp
import numpy as np
from jax.experimental import pallas as pl
from jax.experimental.pallas import tpu as pltpu


_NEG_LOG_10000 = -math.log(10000.0)


def _tensorcores_per_chip():
    """Best-effort TensorCore count of the default device (2 on v4/v5p/v7x-class chips,
    1 on v5e/v6e).  Only used to decide whether >= 2 grid blocks are worth it."""
    try:
        dev = jax.devices()[0]
        if dev.platform != "tpu":
            return 1
        nc = getattr(dev, "num_cores", None)
        if isinstance(nc, int) and nc in (1, 2):
            return nc
        kind = str(getattr(dev, "device_kind", "")).lower()
        if ("v4" in kind) or ("v5p" in kind) or ("7" in kind):
            return 2
        return 1
    except Exception:  # detection is perf-only; never fail the forward pass on it
        return 1


def _choose_row_block(batch, in_lanes, out_lanes, n_cores):
    """Rows per grid block: biggest block whose double-buffered in+out footprint stays
    ~<= 16 MiB of VMEM; on dual-TC chips keep >= 2*n_cores blocks so the 'parallel' grid
    axis actually shards across TensorCores.  Last block may be ragged (masked writes)."""
    bytes_per_row = 4 * (in_lanes + out_lanes)
    cap = max(8, ((8 << 20) // bytes_per_row) // 8 * 8)          # ~8 MiB per block
    tb = min(batch, cap)
    if n_cores > 1 and batch > 8:
        tb = min(tb, max(8, -(-batch // (2 * n_cores))))         # >= 2*n_cores blocks
    if tb < batch:
        tb = max(8, (tb // 8) * 8)                               # sublane-dense blocks
    return max(1, min(tb, batch))


@functools.lru_cache(maxsize=None)
def _point1_tables(feature_dim):
    """Per-lane (freq, phase) rows for npoint == 1.  Output lane j holds
    cos/sin(x * exp(2*(j//4) * -ln(1e4)/D)); even lanes are cos (phase = pi/2)."""
    m = (feature_dim + 1) // 2
    out_lanes = 4 * m
    j = np.arange(out_lanes)
    freq = np.exp((2.0 * (j >> 2)) * (_NEG_LOG_10000 / feature_dim)).astype(np.float32)
    phase = np.where((j & 1) == 0, np.pi / 2, 0.0).astype(np.float32)
    return freq.reshape(1, -1), phase.reshape(1, -1)


@functools.lru_cache(maxsize=None)
def _pointl_tables(feature_dim, npoint):
    """Expansion matrix E (L, 4L) with the inverse frequency folded in, plus the per-lane
    phase row, for the broadcast-legal npoint > 1 cases (npoint == feature_dim//2 or
    feature_dim <= 3).  Lane j of (x @ E) equals x[:, j//4] * inv_freq[j//4]."""
    m = (feature_dim + 1) // 2
    l = npoint
    j = np.arange(4 * l)
    p = j >> 2
    if m > 1:
        fvals = np.exp((2.0 * p) * (_NEG_LOG_10000 / feature_dim))
    else:
        fvals = np.ones_like(p, dtype=np.float64)                # div_term == exp(0) == 1
    e = np.zeros((l, 4 * l), np.float32)
    e[p, j] = fvals
    phase = np.where((j & 1) == 0, np.pi / 2, 0.0).astype(np.float32)
    return e, phase.reshape(1, -1)


def _rope_point1_kernel(x_ref, freq_ref, phase_ref, out_ref):
    # x_ref: (TB, 1) positions.  freq/phase: (1, OUT) grid-invariant, VMEM-resident.
    # One fused multiply-add + one sin per stored f32 (cos lanes via sin(theta + pi/2)).
    out_ref[...] = jnp.sin(x_ref[...] * freq_ref[...] + phase_ref[...])


def _rope_pointl_kernel(x_ref, e_ref, phase_ref, out_ref):
    # x_ref: (TB, L).  e_ref: (L, 4L) exact duplicate-interleave expansion with the inverse
    # frequency folded in, evaluated on the MXU (separate issue slot); HIGHEST precision
    # keeps the f32 positions exact through the bf16-pass decomposition.
    ang = jnp.dot(x_ref[...], e_ref[...], preferred_element_type=jnp.float32,
                  precision=jax.lax.Precision.HIGHEST)
    out_ref[...] = jnp.sin(ang + phase_ref[...])


def rotary_position_encoding_ref(x_position, feature_dim):
    """Pure-JAX mirror of the PyTorch forward (reference + small-problem fallback)."""
    x = jnp.asarray(x_position, jnp.float32)
    B, N = x.shape
    div_term = jnp.exp(
        jnp.arange(0, feature_dim, 2, dtype=jnp.float32)
        * (_NEG_LOG_10000 / feature_dim)).reshape(1, 1, -1)
    sinx = jnp.sin(x * div_term)
    cosx = jnp.cos(x * div_term)
    sin_pos = jnp.stack([sinx, sinx], axis=-1).reshape(B, N, -1)
    cos_pos = jnp.stack([cosx, cosx], axis=-1).reshape(B, N, -1)
    return jnp.stack([cos_pos, sin_pos], axis=-1)


def rotary_position_encoding(x_position, feature_dim, *, use_pallas=None):
    """Pallas implementation of RotaryPositionEncoding.forward.

    Follows the torch broadcasting semantics exactly: x_position (B, N) is multiplied with
    div_term (1, 1, M); this requires N in {1, M} or M == 1.  The torch module detaches its
    output whenever grads would flow, so stop_gradient matches the reference semantics."""
    x = jnp.asarray(x_position, jnp.float32)
    if x.ndim != 2:
        raise ValueError("x_position must be (batch, npoint)")
    B, N = x.shape
    M = (feature_dim + 1) // 2                     # len(arange(0, feature_dim, 2))
    if not (N == 1 or M == 1 or N == M):
        raise ValueError(
            f"torch broadcast of (B,{N}) with (1,1,{M}) is undefined; this module only "
            "supports npoint in {1, feature_dim//2} (or feature_dim <= 3).")
    L = max(N, M)                                  # broadcast length
    K = (2 * L) // N                               # last dim after .view(B, npoint, -1)
    out_lanes = 4 * L

    if use_pallas is None:
        # Launch + pipeline-ramp overhead dwarfs the fused XLA path below ~256 KiB output.
        use_pallas = 4 * B * out_lanes >= (256 << 10)
    if not use_pallas:
        return jax.lax.stop_gradient(rotary_position_encoding_ref(x, feature_dim))

    n_cores = _tensorcores_per_chip()
    in_lanes = 1 if N == 1 else L
    tb = _choose_row_block(B, in_lanes, out_lanes, n_cores)
    grid = (pl.cdiv(B, tb),)
    compiler_params = pltpu.CompilerParams(
        dimension_semantics=("parallel",), vmem_limit_bytes=32 * 1024 * 1024)

    if N == 1:
        # Canonical case (timestep embeddings): single fused kernel, final layout written
        # once, lane-dense, one sin per stored element.
        freq, phase = _point1_tables(feature_dim)
        flat = pl.pallas_call(
            _rope_point1_kernel,
            grid=grid,
            in_specs=[pl.BlockSpec((tb, 1), lambda r: (r, 0)),
                      pl.BlockSpec((1, out_lanes), lambda r: (0, 0)),
                      pl.BlockSpec((1, out_lanes), lambda r: (0, 0))],
            out_specs=pl.BlockSpec((tb, out_lanes), lambda r: (r, 0)),
            out_shape=jax.ShapeDtypeStruct((B, out_lanes), jnp.float32),
            compiler_params=compiler_params,
        )(x, jnp.asarray(freq), jnp.asarray(phase))
    else:
        # Broadcast-legal npoint > 1 cases: the duplicate-interleave + frequency scaling is
        # an exact expansion matmul, so the kernel writes the final slab directly (no XLA
        # epilogue, no extra HBM round trip).
        e, phase = _pointl_tables(feature_dim, N)
        flat = pl.pallas_call(
            _rope_pointl_kernel,
            grid=grid,
            in_specs=[pl.BlockSpec((tb, L), lambda r: (r, 0)),
                      pl.BlockSpec((L, out_lanes), lambda r: (0, 0)),
                      pl.BlockSpec((1, out_lanes), lambda r: (0, 0))],
            out_specs=pl.BlockSpec((tb, out_lanes), lambda r: (r, 0)),
            out_shape=jax.ShapeDtypeStruct((B, out_lanes), jnp.float32),
            compiler_params=compiler_params,
        )(x, jnp.asarray(e), jnp.asarray(phase))

    # Free bitcast to the torch layout (B, npoint, -1, 2); no extra HBM pass.
    return jax.lax.stop_gradient(flat.reshape(B, N, K, 2))


if __name__ == "__main__":
    key = jax.random.PRNGKey(0)
    k1, k2, k3 = jax.random.split(key, 3)

    # 1) Canonical use (timestep embedding): x_position (B, 1), lane-dense output (128).
    D1 = 64
    x1 = jax.random.uniform(k1, (16, 1), dtype=jnp.float32) * 10.0
    out1 = jax.block_until_ready(rotary_position_encoding(x1, D1, use_pallas=True))
    ref1 = rotary_position_encoding_ref(x1, D1)
    assert out1.shape == (16, 1, D1, 2), out1.shape
    np.testing.assert_allclose(np.asarray(out1), np.asarray(ref1), atol=1e-5, rtol=1e-5)

    # 2) Tiny shape forced through the Pallas path.
    D2 = 32
    x2 = jax.random.uniform(k2, (2, 1), dtype=jnp.float32) * 10.0
    out2 = jax.block_until_ready(rotary_position_encoding(x2, D2, use_pallas=True))
    ref2 = rotary_position_encoding_ref(x2, D2)
    assert out2.shape == (2, 1, D2, 2), out2.shape
    np.testing.assert_allclose(np.asarray(out2), np.asarray(ref2), atol=1e-5, rtol=1e-5)

    # 3) Other broadcast-legal case of the original code: npoint == feature_dim // 2
    #    (fully fused matmul-interleave path).
    D3 = 32
    x3 = jax.random.uniform(k3, (8, D3 // 2), dtype=jnp.float32) * 10.0
    out3 = jax.block_until_ready(rotary_position_encoding(x3, D3, use_pallas=True))
    ref3 = rotary_position_encoding_ref(x3, D3)
    assert out3.shape == (8, D3 // 2, 2, 2), out3.shape
    np.testing.assert_allclose(np.asarray(out3), np.asarray(ref3), atol=1e-5, rtol=1e-5)

    # 4) Auto dispatch (tiny problem -> fused jnp fallback), same numerics.
    out4 = jax.block_until_ready(rotary_position_encoding(x2, D2))
    np.testing.assert_allclose(np.asarray(out4), np.asarray(ref2), atol=1e-5, rtol=1e-5)

    print("KERNEL_OK")
</pallas_src>

<mosaic_0001>
module attributes {stable_mosaic.version = 11 : i64} {
  func.func @_rope_point1_kernel(%arg0: i32, %arg1: memref<16x1xf32, #tpu.memory_space<vmem>>, %arg2: memref<1x128xf32, #tpu.memory_space<vmem>>, %arg3: memref<1x128xf32, #tpu.memory_space<vmem>>, %arg4: memref<16x128xf32, #tpu.memory_space<vmem>>) attributes {dimension_semantics = [#tpu.dimension_semantics<parallel>], iteration_bounds = array<i64: 1>, scalar_prefetch = 0 : i64, scratch_operands = 0 : i64, tpu.core_type = #tpu.core_type<tc>, window_params = [{transform_indices = @transform_0, window_bounds = array<i64: 16, 1>}, {pipeline_mode = #tpu.pipeline_mode<synchronous>, transform_indices = @transform_1, window_bounds = array<i64: 1, 128>}, {pipeline_mode = #tpu.pipeline_mode<synchronous>, transform_indices = @transform_2, window_bounds = array<i64: 1, 128>}, {transform_indices = @transform_3, window_bounds = array<i64: 16, 128>}]} {
    %c0 = arith.constant 0 : index
    %c0_0 = arith.constant 0 : index
    %0 = vector.load %arg1[%c0, %c0_0] : memref<16x1xf32, #tpu.memory_space<vmem>>, vector<16x1xf32>
    %c0_1 = arith.constant 0 : index
    %c0_2 = arith.constant 0 : index
    %1 = vector.load %arg2[%c0_1, %c0_2] : memref<1x128xf32, #tpu.memory_space<vmem>>, vector<1x128xf32>
    %2 = vector.broadcast %0 : vector<16x1xf32> to vector<16x128xf32>
    %3 = vector.broadcast %1 : vector<1x128xf32> to vector<16x128xf32>
    %4 = arith.mulf %2, %3 : vector<16x128xf32>
    %c0_3 = arith.constant 0 : index
    %c0_4 = arith.constant 0 : index
    %5 = vector.load %arg3[%c0_3, %c0_4] : memref<1x128xf32, #tpu.memory_space<vmem>>, vector<1x128xf32>
    %6 = vector.broadcast %5 : vector<1x128xf32> to vector<16x128xf32>
    %7 = arith.addf %4, %6 : vector<16x128xf32>
    %8 = math.sin %7 : vector<16x128xf32>
    %c0_5 = arith.constant 0 : index
    %c0_6 = arith.constant 0 : index
    %9 = vector.load %arg4[%c0_5, %c0_6] : memref<16x128xf32, #tpu.memory_space<vmem>>, vector<16x128xf32>
    tpu.vector_store %arg4[%c0_5, %c0_6], %8 {strides = array<i32>} : memref<16x128xf32, #tpu.memory_space<vmem>>, vector<16x128xf32>,
    return
  }
  func.func @transform_0(%arg0: i32) -> (i32, i32) {
    %c0_i32 = arith.constant 0 : i32
    %c0_i32_0 = arith.constant 0 : i32
    return %arg0, %c0_i32 : i32, i32
  }
  func.func @transform_1(%arg0: i32) -> (i32, i32) {
    %c0_i32 = arith.constant 0 : i32
    %c0_i32_0 = arith.constant 0 : i32
    %c0_i32_1 = arith.constant 0 : i32
    return %c0_i32, %c0_i32_0 : i32, i32
  }
  func.func @transform_2(%arg0: i32) -> (i32, i32) {
    %c0_i32 = arith.constant 0 : i32
    %c0_i32_0 = arith.constant 0 : i32
    %c0_i32_1 = arith.constant 0 : i32
    return %c0_i32, %c0_i32_0 : i32, i32
  }
  func.func @transform_3(%arg0: i32) -> (i32, i32) {
    %c0_i32 = arith.constant 0 : i32
    %c0_i32_0 = arith.constant 0 : i32
    return %arg0, %c0_i32 : i32, i32
  }
}

</mosaic_0001>

<bundles_post_ra>
// kernel: tpu_custom_call.1
= control target key start
LH: loop header
LB: loop body
LE: loop exit
PB: predicated region body
PF: predicated region fallthrough
CT: control target
= control target key end

     0   :  { %v332_v1 = vmov 0   ;;  %s454_s0 = inlined_call_operand.vmem [shape: f32[16,1], index: 0, kind: input, shape index: {}]   ;;  %s455_s1 = inlined_call_operand.vmem [shape: f32[1,128], index: 1, kind: input, shape index: {}]   ;;  %s456_s2 = inlined_call_operand.vmem [shape: f32[1,128], index: 2, kind: input, shape index: {}]   ;;  %s457_s3 = inlined_call_operand.hbm [shape: f32[16,128], index: 3, kind: output, shape index: {}]  }
   0x1   :  { %v15_v0 = vld [vmem:[%s454_s0] sm:$0xff]  ;;  %299 = vset.pattern.permute.xlu0 %v332_v1  ;;  %v16_v2 = vld [vmem:[%s454_s0 + $0x8] sm:$0xff] }
   0x2   :  { %20 = vperm.xlu0 %299, %v15_v0  }
   0x3   :  { %8 = vsyncpa [#allocation3], 0  ;;  %v271_v3 = vld [vmem:[%s455_s1] ss:$0 sm:$0xff]  ;;  %v333_v27 = vmov 683565275  }
   0x4   :  { %v272_v4 = vld [vmem:[%s456_s2] ss:$0 sm:$0xff]  ;;  %v334_v31 = vmov 2475754826   ;;  %v335_v33 = vmov 2131351028  }
   0x5   :  { %v336_v35 = vmov 2102212464   ;;  %v337_v37 = vmov 920167782   ;;  %v338_v44 = vmov 1326507024  }
   0x6   :  { %25 = vperm.xlu0 %299, %v16_v2   ;;  %s339_s0 = smov [#allocation2]  }
   0x7   :  { %s260_s1 = sshll.u32 %s339_s0, 4  ;;  %s261_s1 = int_to_ptr.vmem [resolvable:$true] %s260_s1 }
   0x8   :  { %s308_s2 = scalar_lea.vmem %s261_s1, 256  ;;  %p313_p1 = scmp.lt.s32.totalorder %s261_s1, %s261_s1 }
   0x9   :  { %p309_p0 = scmp.ne.s32.totalorder %s261_s1, %s308_s2  ;;  %p314_p2 = scmp.lt.s32.totalorder %s308_s2, %s308_s2 }
   0xb   :  { %p315_p3 = por %p314_p2, %p313_p1 }
   0xd   :  { %p316_p4 = pnand %p315_p3, %p309_p0 }
  0x81   :  { %v21_v5 = vpop.permute.xlu0 %20 }
  0x82   :  { %v34_v6 = vmul.f32 %v271_v3, %v21_v5 }
  0x84   :  { %v374_v7 = vadd.f32 %v272_v4, %v34_v6 }
  0x85   :  { %v26_v8 = vpop.permute.xlu0 %25 }
  0x86   :  { %v45_v9 = vand.u32 2147483647, %v374_v7  ;;  %v48_v10 = vand.u32 2139095040, %v374_v7  ;;  %v35_v11 = vmul.f32 %v271_v3, %v26_v8  ;;  %vm47_vm14 = vcmp.lt.s32.totalorder %v374_v7, 0 }
  0x88   :  { %v49_v12 = vshrl.u32 %v48_v10, 23  ;;  %v378_v13 = vadd.f32 %v272_v4, %v35_v11  ;;  %v52_v14 = vand.u32 8388607, %v45_v9  ;;  %vm46_vm15 = vcmp.le.f32.partialorder %v45_v9, 0.7853982 }
  0x8a   :  { %v273_v15 = vadd.s32 4294967169, %v49_v12  ;;  %v152_v16 = vand.u32 2139095040, %v378_v13  ;;  %v53_v18 = vor.u32 8388608, %v52_v14  ;;  %v149_v20 = vand.u32 2147483647, %v378_v13 }
  0x8c   :  { %v55_v17 = vadd.s32 1, %v273_v15  ;;  %v153_v19 = vshrl.u32 %v152_v16, 23  ;;  %v384_v25 = vshll.u32 %v53_v18, 8  ;;  %v156_v29 = vand.u32 8388607, %v149_v20 }
  0x8e   :  { %vm56_vm0 = vcmp.gt.s32.totalorder %v55_v17, 0  ;;  %v277_v22 = vadd.s32 4294967169, %v153_v19  ;;  %v157_v59 = vor.u32 8388608, %v156_v29 }
  0x8f   :  { %v57_v21 = vsel %vm56_vm0, %v55_v17, 0  ;;  %vm151_vm0 = vcmp.lt.s32.totalorder %v378_v13, 0 }
  0x90   :  { %v58_v23 = vshrl.u32 %v57_v21, 5  ;;  %v59_v24 = vand.u32 31, %v57_v21  ;;  %v159_v30 = vadd.s32 1, %v277_v22  ;;  %v197_v10 = vshll.u32 %v157_v59, 8 }
  0x92   :  { %v60_v26 = vsub.s32 32, %v59_v24  ;;  %v62_v28 = vshll.u32 %v333_v27, %v59_v24  ;;  %v65_v32 = vshll.u32 %v334_v31, %v59_v24  ;;  %v68_v34 = vshll.u32 %v335_v33, %v59_v24 }
  0x93   :  { %v71_v36 = vshll.u32 %v336_v35, %v59_v24  ;;  %v74_v38 = vshll.u32 %v337_v37, %v59_v24  ;;  %vm77_vm1 = vcmp.lt.s32.totalorder %v58_v23, 1  ;;  %vm79_vm2 = vcmp.lt.s32.totalorder %v58_v23, 3 }
  0x94   :  { %v63_v39 = vshrl.u32 %v334_v31, %v60_v26  ;;  %v66_v40 = vshrl.u32 %v335_v33, %v60_v26  ;;  %v69_v41 = vshrl.u32 %v336_v35, %v60_v26  ;;  %v61_v42 = vshrl.u32 %v333_v27, %v60_v26 }
  0x95   :  { %v72_v43 = vshrl.u32 %v337_v37, %v60_v26  ;;  %v75_v45 = vshrl.u32 %v338_v44, %v60_v26  ;;  %vm160_vm3 = vcmp.gt.s32.totalorder %v159_v30, 0  ;;  %vm80_vm4 = vcmp.lt.s32.totalorder %v58_v23, 4 }
  0x96   :  { %v64_v46 = vor.u32 %v63_v39, %v62_v28  ;;  %v67_v47 = vor.u32 %v66_v40, %v65_v32  ;;  %v70_v48 = vor.u32 %v69_v41, %v68_v34  ;;  %v161_v51 = vsel %vm160_vm3, %v159_v30, 0 }
  0x97   :  { %v73_v49 = vor.u32 %v72_v43, %v71_v36  ;;  %v76_v50 = vor.u32 %v75_v45, %v74_v38  ;;  %vm78_vm5 = vcmp.lt.s32.totalorder %v58_v23, 2  ;;  %v163_v62 = vand.u32 31, %v161_v51 }
  0x98   :  { %v81_v52 = vsel %vm77_vm1, %v61_v42, %v64_v46  ;;  %v82_v53 = vsel %vm80_vm4, %v70_v48, 2102212464  ;;  %v85_v54 = vsel %vm77_vm1, %v64_v46, %v67_v47  ;;  %v89_v55 = vsel %vm77_vm1, %v67_v47, %v70_v48 }
  0x99   :  { %v83_v56 = vsel %vm79_vm2, %v67_v47, %v82_v53  ;;  %v86_v57 = vsel %vm80_vm4, %v73_v49, 920167782  ;;  %v90_v58 = vsel %vm80_vm4, %v76_v50, 1326507024  ;;  %v162_v6 = vshrl.u32 %v161_v51, 5 }
  0x9a   :  { %v87_v60 = vsel %vm79_vm2, %v70_v48, %v86_v57  ;;  %v91_v61 = vsel %vm79_vm2, %v73_v49, %v90_v58  ;;  %v84_v63 = vsel %vm78_vm5, %v81_v52, %v83_v56  ;;  %v164_v8 = vsub.s32 32, %v163_v62 }
  0x9b   :  { %v88_v0 = vsel %vm78_vm5, %v85_v54, %v87_v60  ;;  %v92_v1 = vsel %vm78_vm5, %v89_v55, %v91_v61  ;;  %v100_v11 = vmul.u32 %v384_v25, %v84_v63  ;;  %v166_v12 = vshll.u32 %v333_v27, %v163_v62 }
  0x9c   :  { %v397_v2 = vmul.u32.u64.low %v384_v25, %v92_v1  ;;  %v398_v3 = vmul.u32.u64.high %v384_v25, %v92_v1, %v397_v2  ;;  %v401_v4 = vmul.u32.u64.low %v384_v25, %v88_v0  ;;  %v402_v5 = vmul.u32.u64.high %v384_v25, %v88_v0, %v401_v4 }
  0x9d   :  { %v169_v14 = vshll.u32 %v334_v31, %v163_v62  ;;  %v172_v15 = vshll.u32 %v335_v33, %v163_v62  ;;  %v167_v16 = vshrl.u32 %v334_v31, %v164_v8  ;;  %v170_v17 = vshrl.u32 %v335_v33, %v164_v8 }
  0x9e   :  { %v173_v18 = vshrl.u32 %v336_v35, %v164_v8  ;;  %v175_v19 = vshll.u32 %v336_v35, %v163_v62  ;;  %vm102_vm6 = vc.u32 %v398_v3, %v401_v4  ;;  %v103_v21 = vadd.s32 1, %v402_v5 }
  0x9f   :  { %v176_v22 = vshrl.u32 %v337_v37, %v164_v8  ;;  %v178_v23 = vshll.u32 %v337_v37, %v163_v62  ;;  %v168_v24 = vor.u32 %v167_v16, %v166_v12  ;;  %v171_v26 = vor.u32 %v170_v17, %v169_v14 }
  0xa0   :  { %v174_v28 = vor.u32 %v173_v18, %v172_v15  ;;  %v179_v29 = vshrl.u32 %v338_v44, %v164_v8  ;;  %v104_v25 = vsel %vm102_vm6, %v103_v21, %v402_v5  ;;  %vm181_vm7 = vcmp.lt.s32.totalorder %v162_v6, 1 }
  0xa1   :  { %v177_v30 = vor.u32 %v176_v22, %v175_v19  ;;  %vm184_vm8 = vcmp.lt.s32.totalorder %v162_v6, 4  ;;  %v105_v31 = vadd.s32 %v104_v25, %v100_v11  ;;  %vm183_vm9 = vcmp.lt.s32.totalorder %v162_v6, 3 }
  0xa2   :  { %v180_v32 = vor.u32 %v179_v29, %v178_v23  ;;  %v186_v33 = vsel %vm184_vm8, %v174_v28, 2102212464  ;;  %v165_v34 = vshrl.u32 %v333_v27, %v164_v8  ;;  %v189_v35 = vsel %vm181_vm7, %v168_v24, %v171_v26 }
  0xa3   :  { %v190_v36 = vsel %vm184_vm8, %v177_v30, 920167782  ;;  %v193_v38 = vsel %vm181_vm7, %v171_v26, %v174_v28  ;;  %v106_v39 = vadd.s32 536870912, %v105_v31  ;;  %vm182_vm10 = vcmp.lt.s32.totalorder %v162_v6, 2 }
  0xa4   :  { %v191_v37 = vsel %vm183_vm9, %v174_v28, %v190_v36  ;;  %v194_v40 = vsel %vm184_vm8, %v180_v32, 1326507024  ;;  %v185_v41 = vsel %vm181_vm7, %v165_v34, %v168_v24  ;;  %v187_v42 = vsel %vm183_vm9, %v171_v26, %v186_v33 }
  0xa5   :  { %v192_v43 = vsel %vm182_vm10, %v189_v35, %v191_v37  ;;  %v195_v44 = vsel %vm183_vm9, %v177_v30, %v194_v40  ;;  %v107_v45 = vshrl.u32 %v106_v39, 30  ;;  %v188_v51 = vsel %vm182_vm10, %v185_v41, %v187_v42 }
  0xa6   :  { %v196_v46 = vsel %vm182_vm10, %v193_v38, %v195_v44  ;;  %v412_v47 = vmul.u32.u64.low %v197_v10, %v192_v43  ;;  %v413_v48 = vmul.u32.u64.high %v197_v10, %v192_v43, %v412_v47  ;;  %v204_v54 = vmul.u32 %v197_v10, %v188_v51 }
  0xa7   :  { %v415_v49 = vmul.u32.u64.low %v197_v10, %v196_v46  ;;  %v416_v50 = vmul.u32.u64.high %v197_v10, %v196_v46, %v415_v49  ;;  %v108_v27 = vshll.u32 %v107_v45, 30  ;;  %v101_v2 = vadd.s32 %v401_v4, %v398_v3 }
  0xa8   :  { %v207_v53 = vadd.s32 1, %v413_v48  ;;  %v131_v24 = vsub.s32 4, %v107_v45  ;;  %vm431_vm1 = vcmp.le.f32.partialorder %v149_v20, 0.7853982  ;;  %vm137_vm5 = vweird.f32 %v374_v7 }
  0xa9   :  { %v109_v52 = vsub.s32 %v105_v31, %v108_v27  ;;  %vm206_vm11 = vc.u32 %v416_v50, %v412_v47  ;;  %v205_v3 = vadd.s32 %v412_v47, %v416_v50  ;;  %vm241_vm9 = vweird.f32 %v378_v13 }
  0xaa   :  { %v208_v56 = vsel %vm206_vm11, %v207_v53, %v413_v48  ;;  %v132_v33 = vsel %vm47_vm14, %v131_v24, %v107_v45 }
  0xab   :  { %v111_v55 = vsub.s32 0, %v109_v52  ;;  %v209_v57 = vadd.s32 %v208_v56, %v204_v54  ;;  %v134_v39 = vsel %vm46_vm15, 0, %v132_v33 }
  0xac   :  { %v138_v41 = vadd.s32 3, %v134_v39 }
  0xad   :  { %v274_v58 = vmin.u32 %v111_v55, %v109_v52  ;;  %v210_v59 = vadd.s32 536870912, %v209_v57 }
  0xae   :  { %v139_v46 = vand.u32 3, %v138_v41 }
  0xaf   :  { %v113_v60 = vclz %v274_v58  ;;  %v211_v61 = vshrl.u32 %v210_v59, 30 }
  0xb0   :  { %vm144_vm2 = vcmp.eq.s32.totalorder %v139_v46, 2  ;;  %vm141_vm3 = vcmp.eq.s32.totalorder %v139_v46, 0  ;;  %vm140_vm4 = vcmp.lt.s32.totalorder %v139_v46, 2 }
  0xb1   :  { %v275_v62 = vadd.s32 4294967294, %v113_v60  ;;  %v212_v63 = vshll.u32 %v211_v61, 30  ;;  %v235_v43 = vsub.s32 4, %v211_v61 }
  0xb3   :  { %vm276_vm12 = vcmp.lt.s32.totalorder %v275_v62, 0  ;;  %v213_v1 = vsub.s32 %v209_v57, %v212_v63  ;;  %v236_v47 = vsel %vm151_vm0, %v235_v43, %v211_v61 }
  0xb4   :  { %v116_v0 = vsel %vm276_vm12, 0, %v275_v62 }
  0xb5   :  { %v117_v5 = vsub.s32 32, %v116_v0  ;;  %v121_v6 = vsub.s32 4294967266, %v116_v0  ;;  %v215_v8 = vsub.s32 0, %v213_v1  ;;  %v118_v10 = vshll.u32 %v109_v52, %v116_v0 }
  0xb6   :  { %v238_v52 = vsel %vm431_vm1, 0, %v236_v47 }
  0xb7   :  { %v119_v11 = vshrl.u32 %v101_v2, %v117_v5  ;;  %v122_v12 = vadd.s32 127, %v121_v6  ;;  %v278_v14 = vmin.u32 %v215_v8, %v213_v1  ;;  %v242_v55 = vadd.s32 3, %v238_v52 }
  0xb9   :  { %v120_v15 = vor.u32 %v119_v11, %v118_v10  ;;  %v123_v16 = vshll.u32 %v122_v12, 23  ;;  %v217_v17 = vclz %v278_v14  ;;  %v243_v57 = vand.u32 3, %v242_v55 }
  0xbb   :  { %v124_v18 = vor.u32 4788187, %v123_v16  ;;  %v279_v19 = vadd.s32 4294967294, %v217_v17  ;;  %v127_v22 = vcvt.s32.f32 %v120_v15  ;;  %vm248_vm6 = vcmp.eq.s32.totalorder %v243_v57, 2 }
  0xbc   :  { %vm245_vm7 = vcmp.eq.s32.totalorder %v243_v57, 0  ;;  %vm244_vm8 = vcmp.lt.s32.totalorder %v243_v57, 2 }
  0xbd   :  { %v125_v21 = vand.u32 2147483647, %v124_v18  ;;  %vm280_vm13 = vcmp.lt.s32.totalorder %v279_v19, 0 }
  0xbe   :  { %v220_v26 = vsel %vm280_vm13, 0, %v279_v19 }
  0xbf   :  { %v128_v23 = vmul.f32 %v127_v22, %v125_v21  ;;  %v221_v4 = vsub.s32 32, %v220_v26  ;;  %v225_v28 = vsub.s32 4294967266, %v220_v26  ;;  %v222_v25 = vshll.u32 %v213_v1, %v220_v26 }
  0xc1   :  { %v129_v29 = vxor.u32 2147483648, %v128_v23  ;;  %v223_v30 = vshrl.u32 %v205_v3, %v221_v4  ;;  %v226_v31 = vadd.s32 127, %v225_v28 }
  0xc3   :  { %v130_v32 = vsel %vm47_vm14, %v129_v29, %v128_v23  ;;  %v224_v35 = vor.u32 %v223_v30, %v222_v25  ;;  %v227_v36 = vshll.u32 %v226_v31, 23 }
  0xc4   :  { %v133_v34 = vsel %vm46_vm15, %v374_v7, %v130_v32 }
  0xc5   :  { %300 = vcosq.f32 %v133_v34  ;;  %v228_v38 = vor.u32 4788187, %v227_v36  ;;  %v231_v40 = vcvt.s32.f32 %v224_v35 }
  0xc6   :  { %302 = vsinq.f32 %v133_v34 }
  0xc7   :  { %v229_v37 = vand.u32 2147483647, %v228_v38 }
  0xc9   :  { %v232_v42 = vmul.f32 %v231_v40, %v229_v37 }
  0xcb   :  { %v233_v44 = vxor.u32 2147483648, %v232_v42 }
  0xcd   :  { %v234_v45 = vsel %vm151_vm0, %v233_v44, %v232_v42 }
  0xce   :  { %v237_v49 = vsel %vm431_vm1, %v378_v13, %v234_v45 }
  0xcf   :  { %v301_v48 = vpop.eup %300  ;;  %304 = vcosq.f32 %v237_v49 }
  0xd0   :  { %v303_v50 = vpop.eup %302  ;;  %v145_v27 = vxor.u32 2147483648, %v301_v48  ;;  %306 = vsinq.f32 %v237_v49 }
  0xd1   :  { %v142_v51 = vxor.u32 2147483648, %v303_v50 }
  0xd2   :  { %v146_v20 = vsel %vm144_vm2, %v145_v27, %v303_v50 }
  0xd3   :  { %v143_v53 = vsel %vm141_vm3, %v301_v48, %v142_v51 }
  0xd4   :  { %v147_v54 = vsel %vm140_vm4, %v143_v53, %v146_v20 }
  0xd5   :  { %v148_v56 = vsel %vm137_vm5, nan, %v147_v54 }
  0xd6   :  { %253 = vst [vmem:[#allocation2] sm:$0xff] %v148_v56 }
  0xd9   :  { %v305_v58 = vpop.eup %304 }
  0xda   :  { %v307_v59 = vpop.eup %306  ;;  %v249_v60 = vxor.u32 2147483648, %v305_v58 }
  0xdb   :  { %v246_v61 = vxor.u32 2147483648, %v307_v59 }
  0xdc   :  { %v250_v62 = vsel %vm248_vm6, %v249_v60, %v307_v59 }
  0xdd   :  { %v247_v63 = vsel %vm245_vm7, %v305_v58, %v246_v61 }
  0xde   :  { %v251_v0 = vsel %vm244_vm8, %v247_v63, %v250_v62 }
  0xdf   :  { %v252_v7 = vsel %vm241_vm9, nan, %v251_v0 }
  0xe0   :  { %254 = vst [vmem:[#allocation2 + $0x8] sm:$0xff] %v252_v7 }
  0xe1   :  { %319 = shalt.err (!%p316_p4)
}
  0xe2   :  { %s320_s22 = scalar_lea.hbm %s457_s3, 256 }
  0xe3   :  { %p321_p5 = scmp.ne.s32.totalorder %s457_s3, %s320_s22  ;;  %p324_p6 = scmp.lt.u32.totalorder %s320_s22, %s457_s3 }
  0xe5   :  { %p326_p7 = pnand %p324_p6, %p321_p5 }
  0xe7   :  { %329 = shalt.err (!%p326_p7)
}
  0xe8   :  { %s340_s27 = smov 128   ;;  %s341_s28 = smov 8  }
  0xe9   :  { %266 = dma.vmem_to_hbm [thread:$0]  %s261_s1, 256, %s457_s3, [#allocation3], %s340_s27, %s340_s27, %s341_s28  }
  0xea   :  { %330 = dma.done.wait [#allocation3], 256  }
  0xeb   :  { %331 = vsyncadd [#allocation3], 4294967040 }
  0xec   :  { %270 = vsyncpa [#allocation3], 1 }

</bundles_post_ra>
